<compile_context>
chip_gen: v6e
topology: v6e:2x2x1
jax: 0.10.0
libtpu: 0.0.40
codegen_flags: <defaults>
</compile_context>

<pallas_src>
import functools

import jax
import jax.numpy as jnp
from jax.experimental import pallas as pl
from jax.experimental.pallas import tpu as pltpu


_LANE = 1024           # lane-dense last dim (multiple of 128)
_MAX_BLOCK_ROWS = 256  # 256 x 1024 x 4 B = 1 MiB per array per block


def _token_mask_kernel(ids_ref, bits_ref, masked_ref, labels_ref, *,
                       threshold, mask_token):
    ids = ids_ref[...]
    # Uniform uint32 bits: P(bits < threshold) == mask_prob (exact to 2^-32).
    mask = bits_ref[...] < jnp.uint32(threshold)
    mtok = jnp.int32(mask_token)

    masked = jnp.where(mask, mtok, ids)
    masked_ref[...] = masked
    # Labels keep the original id wherever the NEW id equals the mask token;
    # everywhere else -100.  (Matches the PyTorch reference, including
    # positions whose original id already was the mask token.)
    labels_ref[...] = jnp.where(masked == mtok, ids, jnp.int32(-100))


def token_random_masking(input_ids, key, *, mask_prob, mask_token):
    """Returns (masked_input_ids, labels), both int32 with input_ids.shape."""
    orig_shape = input_ids.shape
    ids_flat = input_ids.astype(jnp.int32).reshape(-1)
    n = ids_flat.shape[0]

    # Lane-dense (rows, 1024) layout; rows padded to a multiple of 8, blocks
    # of up to 256 rows (~1 MiB/array) so 2 bufs x 4 arrays stays well inside
    # the scoped VMEM limit on v5e/v6e/v7x while still reaching the HBM
    # roofline.
    rows = pl.cdiv(n, _LANE)
    rows_aligned = pl.cdiv(rows, 8) * 8
    block_rows = min(rows_aligned, _MAX_BLOCK_ROWS)
    rows_padded = pl.cdiv(rows_aligned, block_rows) * block_rows
    n_padded = rows_padded * _LANE
    num_blocks = rows_padded // block_rows

    ids_2d = jnp.pad(ids_flat, (0, n_padded - n)).reshape(rows_padded, _LANE)
    # Fresh random word per element (generated at padded shape) -> no
    # per-tile pattern repetition.
    bits_2d = jax.random.bits(key, (rows_padded, _LANE), dtype=jnp.uint32)

    threshold = min(int(round(mask_prob * (1 << 32))), (1 << 32) - 1)
    kernel = functools.partial(
        _token_mask_kernel, threshold=threshold, mask_token=mask_token)

    block = (block_rows, _LANE)
    spec = pl.BlockSpec(block, lambda i: (i, 0))

    masked_2d, labels_2d = pl.pallas_call(
        kernel,
        out_shape=(
            jax.ShapeDtypeStruct((rows_padded, _LANE), jnp.int32),
            jax.ShapeDtypeStruct((rows_padded, _LANE), jnp.int32),
        ),
        grid=(num_blocks,),
        in_specs=[spec, spec],
        out_specs=(spec, spec),
        compiler_params=pltpu.CompilerParams(
            dimension_semantics=("parallel",)),
        cost_estimate=pl.CostEstimate(
            flops=0, transcendentals=0,
            bytes_accessed=4 * n_padded * 4),  # 2 in + 2 out int32 streams
    )(ids_2d, bits_2d)

    masked = masked_2d.reshape(-1)[:n].reshape(orig_shape)
    labels = labels_2d.reshape(-1)[:n].reshape(orig_shape)
    return masked, labels


if __name__ == "__main__":
    MASK_PROB = 0.3
    MASK_TOKEN = 103
    VOCAB = 1000
    BATCH, SEQ = 2, 8

    root = jax.random.PRNGKey(0)
    key_ids, key_mask = jax.random.split(root)
    input_ids = jax.random.randint(
        key_ids, (BATCH, SEQ), 0, VOCAB, dtype=jnp.int32)

    masked_ids, labels = token_random_masking(
        input_ids, key_mask, mask_prob=MASK_PROB, mask_token=MASK_TOKEN)
    jax.block_until_ready((masked_ids, labels))

    # Structural invariants of the op (mask pattern itself is random):
    masked_pos = masked_ids == MASK_TOKEN
    # Wherever the new id is not the mask token, it equals the original id.
    assert bool(jnp.all(jnp.where(masked_pos, True, masked_ids == input_ids)))
    # Labels carry the original id exactly at mask-token positions, else -100.
    assert bool(jnp.all(
        jnp.where(masked_pos, labels == input_ids, labels == -100)))
    assert masked_ids.shape == input_ids.shape
    assert labels.shape == input_ids.shape

    print("KERNEL_OK")
</pallas_src>

<mosaic_0001>
module attributes {stable_mosaic.version = 11 : i64} {
  func.func @_token_mask_kernel(%arg0: i32, %arg1: memref<8x1024xi32, #tpu.memory_space<vmem>>, %arg2: memref<8x1024xi32, #tpu.memory_space<vmem>>, %arg3: memref<8x1024xi32, #tpu.memory_space<vmem>>, %arg4: memref<8x1024xi32, #tpu.memory_space<vmem>>) attributes {dimension_semantics = [#tpu.dimension_semantics<parallel>], iteration_bounds = array<i64: 1>, scalar_prefetch = 0 : i64, scratch_operands = 0 : i64, tpu.core_type = #tpu.core_type<tc>, window_params = [{transform_indices = @transform_0, window_bounds = array<i64: 8, 1024>}, {transform_indices = @transform_1, window_bounds = array<i64: 8, 1024>}, {transform_indices = @transform_2, window_bounds = array<i64: 8, 1024>}, {transform_indices = @transform_3, window_bounds = array<i64: 8, 1024>}]} {
    %c0 = arith.constant 0 : index
    %c0_0 = arith.constant 0 : index
    %0 = vector.load %arg1[%c0, %c0_0] : memref<8x1024xi32, #tpu.memory_space<vmem>>, vector<8x1024xi32>
    %c0_1 = arith.constant 0 : index
    %c0_2 = arith.constant 0 : index
    %1 = vector.load %arg2[%c0_1, %c0_2] : memref<8x1024xi32, #tpu.memory_space<vmem>>, vector<8x1024xi32>
    %c1288490189_i32 = arith.constant 1288490189 : i32
    %2 = vector.broadcast %c1288490189_i32 : i32 to vector<8x1024xi32>
    %3 = arith.cmpi ult, %1, %2 : vector<8x1024xi32>
    %c103_i32 = arith.constant 103 : i32
    %4 = vector.broadcast %c103_i32 : i32 to vector<8x1024xi32>
    %5 = arith.select %3, %4, %0 : vector<8x1024xi1>, vector<8x1024xi32>
    %c0_3 = arith.constant 0 : index
    %c0_4 = arith.constant 0 : index
    %6 = vector.load %arg3[%c0_3, %c0_4] : memref<8x1024xi32, #tpu.memory_space<vmem>>, vector<8x1024xi32>
    tpu.vector_store %arg3[%c0_3, %c0_4], %5 {strides = array<i32>} : memref<8x1024xi32, #tpu.memory_space<vmem>>, vector<8x1024xi32>,
    %c103_i32_5 = arith.constant 103 : i32
    %7 = vector.broadcast %c103_i32_5 : i32 to vector<8x1024xi32>
    %8 = arith.cmpi eq, %5, %7 : vector<8x1024xi32>
    %c-100_i32 = arith.constant -100 : i32
    %9 = vector.broadcast %c-100_i32 : i32 to vector<8x1024xi32>
    %10 = arith.select %8, %0, %9 : vector<8x1024xi1>, vector<8x1024xi32>
    %c0_6 = arith.constant 0 : index
    %c0_7 = arith.constant 0 : index
    %11 = vector.load %arg4[%c0_6, %c0_7] : memref<8x1024xi32, #tpu.memory_space<vmem>>, vector<8x1024xi32>
    tpu.vector_store %arg4[%c0_6, %c0_7], %10 {strides = array<i32>} : memref<8x1024xi32, #tpu.memory_space<vmem>>, vector<8x1024xi32>,
    return
  }
  func.func @transform_0(%arg0: i32) -> (i32, i32) {
    %c0_i32 = arith.constant 0 : i32
    %c0_i32_0 = arith.constant 0 : i32
    return %arg0, %c0_i32 : i32, i32
  }
  func.func @transform_1(%arg0: i32) -> (i32, i32) {
    %c0_i32 = arith.constant 0 : i32
    %c0_i32_0 = arith.constant 0 : i32
    return %arg0, %c0_i32 : i32, i32
  }
  func.func @transform_2(%arg0: i32) -> (i32, i32) {
    %c0_i32 = arith.constant 0 : i32
    %c0_i32_0 = arith.constant 0 : i32
    return %arg0, %c0_i32 : i32, i32
  }
  func.func @transform_3(%arg0: i32) -> (i32, i32) {
    %c0_i32 = arith.constant 0 : i32
    %c0_i32_0 = arith.constant 0 : i32
    return %arg0, %c0_i32 : i32, i32
  }
}

</mosaic_0001>

<bundles_post_ra>
// kernel: tpu_custom_call.1
= control target key start
LH: loop header
LB: loop body
LE: loop exit
PB: predicated region body
PF: predicated region fallthrough
CT: control target
= control target key end

     0   :  { %9 = vsyncpa [#allocation3], 0  ;;  %s268_s0 = inlined_call_operand.hbm [shape: s32[8,1024], index: 0, kind: input, shape index: {}]   ;;  %s269_s1 = inlined_call_operand.hbm [shape: u32[8,1024], index: 1, kind: input, shape index: {}]   ;;  %s270_s2 = inlined_call_operand.hbm [shape: s32[8,1024], index: 2, kind: output, shape index: {0}]   ;;  %s271_s3 = inlined_call_operand.hbm [shape: s32[8,1024], index: 3, kind: output, shape index: {1}]  }
   0x1   :  { %10 = vsyncpa [#allocation6], 0 }
   0x2   :  { %11 = vsyncpa [#allocation4], 0 }
   0x3   :  { %12 = vsyncpa [#allocation9], 0  ;;  %s225_s12 = smov [#allocation2]   ;;  %s226_s14 = smov [#allocation5]  }
   0x4   :  { %s19_s13 = sshll.u32 %s225_s12, 4  ;;  %s29_s15 = sshll.u32 %s226_s14, 4  ;;  %s20_s13 = int_to_ptr.vmem [resolvable:$true] %s19_s13  ;;  %s30_s15 = int_to_ptr.vmem [resolvable:$true] %s29_s15 }
   0x5   :  { %s145_s16 = scalar_lea.vmem %s20_s13, 1024  ;;  %p150_p1 = scmp.lt.s32.totalorder %s20_s13, %s20_s13 }
   0x6   :  { %p146_p0 = scmp.ne.s32.totalorder %s20_s13, %s145_s16  ;;  %p151_p2 = scmp.lt.s32.totalorder %s145_s16, %s145_s16 }
   0x8   :  { %p152_p3 = por %p151_p2, %p150_p1 }
   0xa   :  { %p153_p4 = pnand %p152_p3, %p146_p0 }
   0xc   :  { %156 = shalt.err (!%p153_p4)
}
   0xd   :  { %22 = dma.hbm_to_vmem [thread:$0]  %s268_s0, 1024, %s20_s13, [#allocation3]  }
   0xe   :  { %s165_s19 = scalar_lea.vmem %s30_s15, 1024  ;;  %p170_p6 = scmp.lt.s32.totalorder %s30_s15, %s30_s15 }
   0xf   :  { %p166_p5 = scmp.ne.s32.totalorder %s30_s15, %s165_s19  ;;  %p171_p7 = scmp.lt.s32.totalorder %s165_s19, %s165_s19 }
  0x11   :  { %p172_p8 = por %p171_p7, %p170_p6 }
  0x13   :  { %p173_p9 = pnand %p172_p8, %p166_p5 }
  0x15   :  { %176 = shalt.err (!%p173_p9)
}
  0x16   :  { %32 = dma.hbm_to_vmem [thread:$0]  %s269_s1, 1024, %s30_s15, [#allocation6]  }
  0x17   :  { %217 = dma.done.wait [#allocation3], 1024  }
  0x18   :  { %218 = vsyncadd [#allocation3], 4294966272 }
  0x19   :  { %219 = dma.done.wait [#allocation6], 1024  }
  0x1a   :  { %220 = vsyncadd [#allocation6], 4294966272  ;;  %v39_v0 = vld [vmem:[#allocation2] sm:$0xff]  ;;  %v40_v2 = vld [vmem:[#allocation2 + $0x8] sm:$0xff]  ;;  %s227_s22 = smov [#allocation7]   ;;  %s228_s23 = smov [#allocation8]  }
  0x1b   :  { %v47_v1 = vld [vmem:[#allocation5] sm:$0xff]  ;;  %s255_s0 = sshll.u32 %s227_s22, 4  ;;  %v48_v3 = vld [vmem:[#allocation5 + $0x8] sm:$0xff]  ;;  %v41_v4 = vld [vmem:[#allocation2 + $0x10] sm:$0xff]  ;;  %s257_s24 = sshll.u32 %s228_s23, 4  ;;  %s110_s0 = int_to_ptr.vmem [resolvable:$true] %s255_s0  ;;  %s120_s24 = int_to_ptr.vmem [resolvable:$true] %s257_s24 }
  0x1c   :  { %vm55_vm0 = vcmp.lt.u32.totalorder %v47_v1, 1288490189  ;;  %v49_v5 = vld [vmem:[#allocation5 + $0x10] sm:$0xff]  ;;  %vm56_vm1 = vcmp.lt.u32.totalorder %v48_v3, 1288490189  ;;  %v42_v7 = vld [vmem:[#allocation2 + $0x18] sm:$0xff]  ;;  %p182_p11 = scmp.lt.s32.totalorder %s110_s0, %s110_s0 }
  0x1d   :  { %v63_v6 = vsel %vm55_vm0, 103, %v39_v0  ;;  %vm57_vm2 = vcmp.lt.u32.totalorder %v49_v5, 1288490189  ;;  %v64_v8 = vsel %vm56_vm1, 103, %v40_v2  ;;  %v50_v10 = vld [vmem:[#allocation5 + $0x18] sm:$0xff]  ;;  %v43_v11 = vld [vmem:[#allocation2 + $0x20] sm:$0xff] }
  0x1e   :  { %71 = vst [vmem:[#allocation7] sm:$0xff] %v63_v6  ;;  %v65_v9 = vsel %vm57_vm2, 103, %v41_v4  ;;  %v51_v12 = vld [vmem:[#allocation5 + $0x20] sm:$0xff]  ;;  %vm79_vm3 = vcmp.eq.s32.totalorder %v63_v6, 103  ;;  %72 = vst [vmem:[#allocation7 + $0x8] sm:$0xff] %v64_v8  ;;  %v44_v13 = vld [vmem:[#allocation2 + $0x28] sm:$0xff] }
  0x1f   :  { %73 = vst [vmem:[#allocation7 + $0x10] sm:$0xff] %v65_v9  ;;  %vm58_vm4 = vcmp.lt.u32.totalorder %v50_v10, 1288490189  ;;  %vm59_vm5 = vcmp.lt.u32.totalorder %v51_v12, 1288490189  ;;  %v52_v14 = vld [vmem:[#allocation5 + $0x28] sm:$0xff] }
  0x20   :  { %v66_v15 = vsel %vm58_vm4, 103, %v42_v7  ;;  %v67_v16 = vsel %vm59_vm5, 103, %v43_v11  ;;  %vm60_vm6 = vcmp.lt.u32.totalorder %v52_v14, 1288490189  ;;  %v45_v17 = vld [vmem:[#allocation2 + $0x30] sm:$0xff]  ;;  %v46_v20 = vld [vmem:[#allocation2 + $0x38] sm:$0xff] }
  0x21   :  { %v53_v18 = vld [vmem:[#allocation5 + $0x30] sm:$0xff]  ;;  %74 = vst [vmem:[#allocation7 + $0x18] sm:$0xff] %v66_v15  ;;  %75 = vst [vmem:[#allocation7 + $0x20] sm:$0xff] %v67_v16  ;;  %v68_v19 = vsel %vm60_vm6, 103, %v44_v13  ;;  %v54_v21 = vld [vmem:[#allocation5 + $0x38] sm:$0xff]  ;;  %v87_v22 = vsel %vm79_vm3, %v39_v0, 4294967196 }
  0x22   :  { %vm61_vm7 = vcmp.lt.u32.totalorder %v53_v18, 1288490189  ;;  %76 = vst [vmem:[#allocation7 + $0x28] sm:$0xff] %v68_v19  ;;  %vm62_vm8 = vcmp.lt.u32.totalorder %v54_v21, 1288490189  ;;  %95 = vst [vmem:[#allocation8] sm:$0xff] %v87_v22 }
  0x23   :  { %v69_v23 = vsel %vm61_vm7, 103, %v45_v17  ;;  %vm80_vm9 = vcmp.eq.s32.totalorder %v64_v8, 103  ;;  %vm81_vm10 = vcmp.eq.s32.totalorder %v65_v9, 103  ;;  %v70_v24 = vsel %vm62_vm8, 103, %v46_v20  ;;  %s177_s1 = scalar_lea.vmem %s110_s0, 1024 }
  0x24   :  { %77 = vst [vmem:[#allocation7 + $0x30] sm:$0xff] %v69_v23  ;;  %v88_v25 = vsel %vm80_vm9, %v40_v2, 4294967196  ;;  %v89_v26 = vsel %vm81_vm10, %v41_v4, 4294967196  ;;  %vm82_vm11 = vcmp.eq.s32.totalorder %v66_v15, 103  ;;  %78 = vst [vmem:[#allocation7 + $0x38] sm:$0xff] %v70_v24  ;;  %vm83_vm12 = vcmp.eq.s32.totalorder %v67_v16, 103  ;;  %p178_p10 = scmp.ne.s32.totalorder %s110_s0, %s177_s1  ;;  %p183_p12 = scmp.lt.s32.totalorder %s177_s1, %s177_s1 }
  0x25   :  { %96 = vst [vmem:[#allocation8 + $0x8] sm:$0xff] %v88_v25  ;;  %97 = vst [vmem:[#allocation8 + $0x10] sm:$0xff] %v89_v26  ;;  %v90_v27 = vsel %vm82_vm11, %v42_v7, 4294967196  ;;  %vm84_vm13 = vcmp.eq.s32.totalorder %v68_v19, 103  ;;  %vm85_vm14 = vcmp.eq.s32.totalorder %v69_v23, 103  ;;  %v91_v28 = vsel %vm83_vm12, %v43_v11, 4294967196 }
  0x26   :  { %98 = vst [vmem:[#allocation8 + $0x18] sm:$0xff] %v90_v27  ;;  %v92_v29 = vsel %vm84_vm13, %v44_v13, 4294967196  ;;  %v93_v30 = vsel %vm85_vm14, %v45_v17, 4294967196  ;;  %vm86_vm15 = vcmp.eq.s32.totalorder %v70_v24, 103  ;;  %p184_p13 = por %p183_p12, %p182_p11 }
  0x28   :  { %p185_p0 = pnand %p184_p13, %p178_p10 }
  0x2a   :  { %188 = shalt.err (!%p185_p0)
}
  0x2b   :  { %112 = dma.vmem_to_hbm [thread:$0]  %s110_s0, 1024, %s270_s2, [#allocation4]   ;;  %99 = vst [vmem:[#allocation8 + $0x20] sm:$0xff] %v91_v28  ;;  %100 = vst [vmem:[#allocation8 + $0x28] sm:$0xff] %v92_v29  ;;  %v94_v31 = vsel %vm86_vm15, %v46_v20, 4294967196 }
  0x2c   :  { %101 = vst [vmem:[#allocation8 + $0x30] sm:$0xff] %v93_v30  ;;  %102 = vst [vmem:[#allocation8 + $0x38] sm:$0xff] %v94_v31  ;;  %s197_s27 = scalar_lea.vmem %s120_s24, 1024  ;;  %p202_p2 = scmp.lt.s32.totalorder %s120_s24, %s120_s24 }
  0x2d   :  { %p198_p1 = scmp.ne.s32.totalorder %s120_s24, %s197_s27  ;;  %p203_p3 = scmp.lt.s32.totalorder %s197_s27, %s197_s27 }
  0x2f   :  { %p204_p4 = por %p203_p3, %p202_p2 }
  0x31   :  { %p205_p5 = pnand %p204_p4, %p198_p1 }
  0x33   :  { %208 = shalt.err (!%p205_p5)
}
  0x34   :  { %122 = dma.vmem_to_hbm [thread:$0]  %s120_s24, 1024, %s271_s3, [#allocation9]  }
  0x35   :  { %221 = dma.done.wait [#allocation4], 1024  }
  0x36   :  { %222 = vsyncadd [#allocation4], 4294966272 }
  0x37   :  { %223 = dma.done.wait [#allocation9], 1024  }
  0x38   :  { %224 = vsyncadd [#allocation9], 4294966272 }
  0x39   :  { %129 = vsyncpa [#allocation3], 1 }
  0x3a   :  { %130 = vsyncpa [#allocation6], 1 }
  0x3b   :  { %131 = vsyncpa [#allocation4], 1 }
  0x3c   :  { %132 = vsyncpa [#allocation9], 1 }

</bundles_post_ra>
